<compile_context>
chip_gen: v7x
topology: tpu7x:2x2x1
jax: 0.10.0
libtpu: 0.0.40
codegen_flags: <defaults>
</compile_context>

<pallas_src>
import functools

import jax
import jax.numpy as jnp
from jax.experimental import pallas as pl
from jax.experimental.pallas import tpu as pltpu

_LANE = 128
_MIB = 1024 * 1024
# Below this size a single full-extent block is fine (pipelining buys nothing).
_MULTI_STEP_THRESHOLD_BYTES = 1 * _MIB
# Minimum grid steps for tensors above the threshold (>= 2 per TC on v7x).
_MIN_STEPS_LARGE = 4


def _target_tile_bytes():
    """Generation-aware tile target: 4 MiB on v7x, 2 MiB elsewhere (v5e-safe)."""
    try:
        kind = jax.devices()[0].device_kind.lower()
    except Exception:  # pragma: no cover - defensive; fall back to safe default
        kind = ""
    if ("v7" in kind) or ("tpu7" in kind):
        return 4 * _MIB
    return 2 * _MIB


def _sublane_rows(dtype):
    """Packed sublane count: 8 for 32-bit, 16 for 16-bit, 32 for 8-bit dtypes."""
    itemsize = jnp.dtype(dtype).itemsize
    return max(8, 32 // itemsize)


def _make_scale_kernel(lam, out_dtype):
    """Elementwise VPU scale; lambda baked in, computed in f32, cast once."""
    lam = float(lam)  # lambda_ must be a static Python scalar (nondiff arg)
    compute_dtype = (
        jnp.float32 if jnp.issubdtype(jnp.dtype(out_dtype), jnp.floating)
        else jnp.dtype(out_dtype)
    )

    def kernel(g_ref, o_ref):
        g = g_ref[...].astype(compute_dtype)
        o_ref[...] = (g * jnp.asarray(lam, compute_dtype)).astype(o_ref.dtype)

    return kernel


def _choose_block_rows(rows, cols, itemsize, sub, target_tile_bytes, min_steps):
    """Sublane-aligned row block: ~target bytes, but >= min_steps grid steps."""
    br = (target_tile_bytes // (cols * itemsize)) // sub * sub
    br = max(sub, br)
    if min_steps > 1:
        # Shrink so cdiv(rows, br) >= min_steps (keeps prefetch/writeback
        # overlapped and both v7x TensorCores busy).
        cap = max(sub, (rows // min_steps) // sub * sub)
        br = min(br, cap)
    if br >= rows:
        br = rows  # single full-extent block (always a legal BlockSpec)
    return br


def _scale_pallas(g, lam):
    """dx = lam * g, computed by a lane-dense, in-place tiled Pallas kernel."""
    orig_shape, orig_dtype = g.shape, g.dtype
    n = g.size
    if n == 0:
        return g

    compute_dtype = (
        jnp.float32 if jnp.issubdtype(orig_dtype, jnp.floating) else orig_dtype
    )

    flat = g.reshape(-1)

    # Widest lane-dense column count that divides the element count
    # (unmasked, full-width vst stores).
    cols = None
    for c in (1024, 512, 256, _LANE):
        if n % c == 0:
            cols = c
            break
    if cols is None:
        # Rare ragged case (< 1 multiple of 128): a plain fused jnp multiply is
        # already at the 2N-byte HBM roofline; pad+slice would triple traffic.
        return (flat.astype(compute_dtype)
                * jnp.asarray(float(lam), compute_dtype)
                ).astype(orig_dtype).reshape(orig_shape)

    rows = flat.shape[0] // cols
    g2d = flat.reshape(rows, cols)  # metadata-only reshape, no HBM copy

    itemsize = jnp.dtype(orig_dtype).itemsize
    sub = _sublane_rows(orig_dtype)
    total_bytes = n * itemsize
    min_steps = _MIN_STEPS_LARGE if total_bytes > _MULTI_STEP_THRESHOLD_BYTES else 1
    block_rows = _choose_block_rows(
        rows, cols, itemsize, sub, _target_tile_bytes(), min_steps)
    grid = (pl.cdiv(rows, block_rows),)

    block_bytes = block_rows * cols * itemsize
    # 4 live buffers (double-buffered in + out) plus f32-intermediate headroom.
    vmem_limit = int(min(48 * _MIB, max(16 * _MIB, 8 * block_bytes)))

    out2d = pl.pallas_call(
        _make_scale_kernel(lam, orig_dtype),
        out_shape=jax.ShapeDtypeStruct(g2d.shape, g2d.dtype),
        grid_spec=pl.GridSpec(
            grid=grid,
            in_specs=[pl.BlockSpec((block_rows, cols), lambda i: (i, 0))],
            out_specs=pl.BlockSpec((block_rows, cols), lambda i: (i, 0)),
        ),
        compiler_params=pltpu.CompilerParams(
            dimension_semantics=("parallel",),
            vmem_limit_bytes=vmem_limit,
        ),
        cost_estimate=pl.CostEstimate(
            flops=n, transcendentals=0, bytes_accessed=2 * n * itemsize),
        # Write dx in place over g's HBM buffer: no second full-size allocation.
        input_output_aliases={0: 0},
    )(g2d)

    return out2d.reshape(orig_shape)


@functools.partial(jax.custom_vjp, nondiff_argnums=(1,))
def gradient_reversal(x, lambda_):
    """Forward = identity. Backward = lambda_ * upstream grads (Pallas kernel).

    Note: lambda_ must be a static Python scalar (it is a nondiff argument).
    """
    # PyTorch's x.clone() exists only for autograd aliasing rules; JAX arrays
    # are immutable, so identity is simply `x` (zero HBM traffic).
    return x


def _grl_fwd(x, lambda_):
    return x, None


def _grl_bwd(lambda_, _, g):
    # Matches GradientReversalFunction.backward: dx = lambda_ * grads, (dx, None)
    return (_scale_pallas(g, lambda_),)


gradient_reversal.defvjp(_grl_fwd, _grl_bwd)


class GradientReversal:
    """JAX/Pallas equivalent of the PyTorch GradientReversal module (no params)."""

    def __call__(self, x, lambda_):
        return gradient_reversal(x, lambda_)


if __name__ == "__main__":
    key = jax.random.PRNGKey(0)
    x = jax.random.normal(key, (2, 4, 16, 16), dtype=jnp.float32)  # NCHW
    lambda_ = -0.5

    mod = GradientReversal()

    # Forward: identity.
    y = mod(x, lambda_)
    jax.block_until_ready(y)
    assert y.shape == x.shape and y.dtype == x.dtype
    assert bool(jnp.allclose(y, x)), "forward must be identity"

    # Backward (f32): upstream grads scaled by lambda_ (Pallas kernel).
    loss_fn = lambda inp: jnp.sum(gradient_reversal(inp, lambda_) * 3.0)
    dx = jax.grad(loss_fn)(x)
    jax.block_until_ready(dx)
    assert bool(jnp.allclose(dx, jnp.full_like(x, 3.0 * lambda_), atol=1e-6)), \
        "backward must scale grads by lambda_"

    # Backward (bf16): exercises the f32-compute / cast-once path.
    xb = x.astype(jnp.bfloat16)
    loss_fn_b = lambda inp: jnp.sum(
        gradient_reversal(inp, lambda_).astype(jnp.float32) * 3.0)
    dxb = jax.grad(loss_fn_b)(xb)
    jax.block_until_ready(dxb)
    assert dxb.dtype == jnp.bfloat16
    assert bool(jnp.allclose(dxb.astype(jnp.float32),
                             jnp.full(x.shape, 3.0 * lambda_), atol=1e-2)), \
        "bf16 backward must scale grads by lambda_"

    print("KERNEL_OK")
</pallas_src>

<mosaic_0001>
module attributes {stable_mosaic.version = 11 : i64} {
  func.func @kernel(%arg0: i32, %arg1: memref<2x1024xf32, #tpu.memory_space<vmem>>, %arg2: memref<2x1024xf32, #tpu.memory_space<vmem>>) attributes {dimension_semantics = [#tpu.dimension_semantics<parallel>], iteration_bounds = array<i64: 1>, scalar_prefetch = 0 : i64, scratch_operands = 0 : i64, tpu.core_type = #tpu.core_type<tc>, window_params = [{transform_indices = @transform_0, window_bounds = array<i64: 2, 1024>}, {transform_indices = @transform_1, window_bounds = array<i64: 2, 1024>}]} {
    %c0 = arith.constant 0 : index
    %c0_0 = arith.constant 0 : index
    %0 = vector.load %arg1[%c0, %c0_0] : memref<2x1024xf32, #tpu.memory_space<vmem>>, vector<2x1024xf32>
    %cst = arith.constant -5.000000e-01 : f32
    %1 = vector.broadcast %cst : f32 to vector<2x1024xf32>
    %2 = arith.mulf %0, %1 : vector<2x1024xf32>
    %c0_1 = arith.constant 0 : index
    %c0_2 = arith.constant 0 : index
    %3 = vector.load %arg2[%c0_1, %c0_2] : memref<2x1024xf32, #tpu.memory_space<vmem>>, vector<2x1024xf32>
    tpu.vector_store %arg2[%c0_1, %c0_2], %2 {strides = array<i32>} : memref<2x1024xf32, #tpu.memory_space<vmem>>, vector<2x1024xf32>,
    return
  }
  func.func @transform_0(%arg0: i32) -> (i32, i32) {
    %c0_i32 = arith.constant 0 : i32
    %c0_i32_0 = arith.constant 0 : i32
    return %arg0, %c0_i32 : i32, i32
  }
  func.func @transform_1(%arg0: i32) -> (i32, i32) {
    %c0_i32 = arith.constant 0 : i32
    %c0_i32_0 = arith.constant 0 : i32
    return %arg0, %c0_i32 : i32, i32
  }
}

</mosaic_0001>

<bundles_post_ra>
// kernel: tpu_custom_call.1
= control target key start
LH: loop header
LB: loop body
LE: loop exit
PB: predicated region body
PF: predicated region fallthrough
CT: control target
= control target key end

     0   :  { %6 = vsyncpa [#allocation3], 0  ;;  %s128_s0 = inlined_call_operand.hbm [shape: f32[2,1024], index: 0, kind: input, shape index: {}, may-alias: {0,1}]   ;;  %s129_s1 = inlined_call_operand.hbm [shape: f32[2,1024], index: 1, kind: output, shape index: {}, may-alias: {0,1}]  }
   0x1   :  { %7 = vsyncpa [#allocation4], 0  ;;  %s92_s6 = smov [#allocation2]   ;;  %s44_s10 = scalar_lea.hbm %s128_s0, 256 }
   0x2   :  { %s14_s7 = sshll.u32 %s92_s6, 4  ;;  %p45_p0 = scmp.ne.s32.totalorder %s128_s0, %s44_s10  ;;  %s15_s7 = int_to_ptr.vmem [resolvable:$true] %s14_s7 }
   0x3   :  { %p48_p1 = scmp.lt.u32.totalorder %s44_s10, %s128_s0 }
   0x5   :  { %p50_p2 = pnand %p48_p1, %p45_p0 }
   0x7   :  { %53 = shalt.err (!%p50_p2)
}
   0x8   :  { %s54_s15 = scalar_lea.vmem %s15_s7, 256  ;;  %p59_p4 = scmp.lt.s32.totalorder %s15_s7, %s15_s7 }
   0x9   :  { %p55_p3 = scmp.ne.s32.totalorder %s15_s7, %s54_s15  ;;  %p60_p5 = scmp.lt.s32.totalorder %s54_s15, %s54_s15 }
   0xb   :  { %p61_p6 = por %p60_p5, %p59_p4 }
   0xd   :  { %p62_p7 = pnand %p61_p6, %p55_p3 }
   0xf   :  { %65 = shalt.err (!%p62_p7)
}
  0x10   :  { %17 = dma.hbm_to_vmem [thread:$0]  %s128_s0, 256, %s15_s7, [#allocation3]  }
  0x11   :  { %88 = dma.done.wait [#allocation3], 256  }
  0x12   :  { %89 = vsyncadd [#allocation3], 4294967040  ;;  %s93_s18 = smov [#allocation5]   ;;  %v21_v0 = vld [vmem:[#allocation2] sm:$0xff]  ;;  %v22_v1 = vld [vmem:[#allocation2 + $0x8] sm:$0xff] }
  0x13   :  { %s33_s19 = sshll.u32 %s93_s18, 4  ;;  %v23_v2 = vmul.f32 -0.5, %v21_v0  ;;  %v24_v3 = vmul.f32 -0.5, %v22_v1  ;;  %s34_s19 = int_to_ptr.vmem [resolvable:$true] %s33_s19 }
  0x14   :  { %s66_s20 = scalar_lea.vmem %s34_s19, 256  ;;  %p71_p9 = scmp.lt.s32.totalorder %s34_s19, %s34_s19 }
  0x15   :  { %25 = vst [vmem:[#allocation5] sm:$0xff] %v23_v2  ;;  %26 = vst [vmem:[#allocation5 + $0x8] sm:$0xff] %v24_v3  ;;  %p67_p8 = scmp.ne.s32.totalorder %s34_s19, %s66_s20  ;;  %p72_p10 = scmp.lt.s32.totalorder %s66_s20, %s66_s20 }
  0x17   :  { %p73_p11 = por %p72_p10, %p71_p9 }
  0x19   :  { %p74_p12 = pnand %p73_p11, %p67_p8 }
  0x1b   :  { %77 = shalt.err (!%p74_p12)
}
  0x1c   :  { %s78_s22 = scalar_lea.hbm %s129_s1, 256 }
  0x1d   :  { %p79_p13 = scmp.ne.s32.totalorder %s129_s1, %s78_s22  ;;  %p82_p0 = scmp.lt.u32.totalorder %s78_s22, %s129_s1 }
  0x1f   :  { %p84_p1 = pnand %p82_p0, %p79_p13 }
  0x21   :  { %87 = shalt.err (!%p84_p1)
}
  0x22   :  { %36 = dma.vmem_to_hbm [thread:$0]  %s34_s19, 256, %s129_s1, [#allocation4]  }
  0x23   :  { %90 = dma.done.wait [#allocation4], 256  }
  0x24   :  { %91 = vsyncadd [#allocation4], 4294967040 }
  0x25   :  { %40 = vsyncpa [#allocation3], 1 }
  0x26   :  { %41 = vsyncpa [#allocation4], 1 }

</bundles_post_ra>
